<compile_context>
chip_gen: v5e
topology: v5e:2x2
jax: 0.10.0
libtpu: 0.0.40
codegen_flags: <defaults>
</compile_context>

<pallas_src>
import functools

import jax
import jax.numpy as jnp
from jax.experimental import pallas as pl
from jax.experimental.pallas import tpu as pltpu

LN_EPS = 1e-5  # PyTorch nn.LayerNorm default eps

# Row indices inside the packed (9, max_feature) parameter slab.
_B1, _G1, _BE1, _B2, _G2, _BE2, _BA, _WQ, _BQ = range(9)


def _layernorm(x, gamma, beta):
    # One-pass mean / (biased) variance, matching PyTorch nn.LayerNorm.
    mu = jnp.mean(x, axis=-1, keepdims=True)
    ex2 = jnp.mean(x * x, axis=-1, keepdims=True)
    var = jnp.maximum(ex2 - mu * mu, 0.0)
    inv = jax.lax.rsqrt(var + LN_EPS)
    return (x - mu) * inv * gamma + beta


def critic_kernel(xcat_ref, w_in_ref, w2_ref, pvec_ref, out_ref, *, fc1, fc2):
    x = xcat_ref[...]                     # (TB, input_dim + n_actions) f32
    w_in = w_in_ref[...]                  # (input_dim + n_actions, fc1 + fc2)
    w2 = w2_ref[...]                      # (fc1, fc2)
    P = pvec_ref[...]                     # (9, max(fc1, fc2)) f32 slab

    b1 = P[_B1:_B1 + 1, :fc1]
    g1 = P[_G1:_G1 + 1, :fc1]
    be1 = P[_BE1:_BE1 + 1, :fc1]
    b2 = P[_B2:_B2 + 1, :fc2]
    g2 = P[_G2:_G2 + 1, :fc2]
    be2 = P[_BE2:_BE2 + 1, :fc2]
    ba = P[_BA:_BA + 1, :fc2]
    wq = P[_WQ:_WQ + 1, :fc2]
    bq = P[_BQ:_BQ + 1, 0:1]

    # Fused fc1 + action_value matmul (block-diagonal weight).
    h_all = jnp.dot(x.astype(w_in.dtype), w_in,
                    preferred_element_type=jnp.float32)   # (TB, fc1 + fc2)
    h = h_all[:, :fc1] + b1                                # fc1 branch
    av = jnp.maximum(h_all[:, fc1:] + ba, 0.0)             # action branch -> relu

    # fc1 -> LayerNorm -> relu
    h = jnp.maximum(_layernorm(h, g1, be1), 0.0)

    # fc2 -> LayerNorm   (no relu here, matching the PyTorch forward)
    s = jnp.dot(h.astype(w2.dtype), w2,
                preferred_element_type=jnp.float32) + b2
    s = _layernorm(s, g2, be2)

    # combine, relu, q head as VPU mul + cross-lane reduction (output width 1)
    sa = jnp.maximum(s + av, 0.0)
    q = jnp.sum(sa * wq, axis=-1, keepdims=True) + bq
    out_ref[...] = q.astype(out_ref.dtype)


def pack_critic_params(p, matmul_dtype=jnp.float32):
    """Pack logical params into the fused kernel layout.

    Returns dict with:
      w_in : (input_dim + n_actions, fc1 + fc2)  block-diag [[w1, 0], [0, wa]]
      w2   : (fc1, fc2)
      pvec : (9, max(fc1, fc2)) f32 slab of biases / LN params / q-head row
    """
    input_dim, fc1 = p["w1"].shape
    n_actions, fc2 = p["wa"].shape
    din, dout = input_dim + n_actions, fc1 + fc2
    maxf = max(fc1, fc2)

    w_in = jnp.zeros((din, dout), jnp.float32)
    w_in = w_in.at[:input_dim, :fc1].set(p["w1"])
    w_in = w_in.at[input_dim:, fc1:].set(p["wa"])

    pvec = jnp.zeros((9, maxf), jnp.float32)
    pvec = pvec.at[_B1, :fc1].set(p["b1"][0])
    pvec = pvec.at[_G1, :fc1].set(p["g1"][0])
    pvec = pvec.at[_BE1, :fc1].set(p["be1"][0])
    pvec = pvec.at[_B2, :fc2].set(p["b2"][0])
    pvec = pvec.at[_G2, :fc2].set(p["g2"][0])
    pvec = pvec.at[_BE2, :fc2].set(p["be2"][0])
    pvec = pvec.at[_BA, :fc2].set(p["ba"][0])
    pvec = pvec.at[_WQ, :fc2].set(p["wq"][:, 0])
    pvec = pvec.at[_BQ, 0].set(p["bq"][0, 0])

    return {
        "w_in": w_in.astype(matmul_dtype),
        "w2": p["w2"].astype(matmul_dtype),
        "pvec": pvec,
        "dims": (input_dim, n_actions, fc1, fc2),
    }


def critic_forward(state, action, packed, *, block_b=256):
    input_dim, n_actions, fc1, fc2 = packed["dims"]
    B = state.shape[0]
    din = input_dim + n_actions

    # Concatenate state/action once in the wrapper (enables the fused matmul).
    xcat = jnp.concatenate(
        [state.astype(jnp.float32), action.astype(jnp.float32)], axis=-1)

    # Batch tile: sublane-aligned (multiple of 8) unless it covers all of B.
    # NOTE: at scaled-up hidden sizes re-derive block_b against v7x's 64 MiB
    # VMEM (resident weights + 2x double-buffered (TB, feature) tiles).
    tb = min(block_b, B)
    if tb != B:
        tb = max(8, (tb // 8) * 8)
    grid = (pl.cdiv(B, tb),)

    w_in, w2, pvec = packed["w_in"], packed["w2"], packed["pvec"]
    kernel = functools.partial(critic_kernel, fc1=fc1, fc2=fc2)

    return pl.pallas_call(
        kernel,
        out_shape=jax.ShapeDtypeStruct((B, 1), jnp.float32),
        grid_spec=pltpu.PrefetchScalarGridSpec(
            num_scalar_prefetch=0,
            grid=grid,
            in_specs=[
                # Activations: tiled over the batch grid (double-buffered DMA).
                pl.BlockSpec((tb, din), lambda i: (i, 0)),
                # Weights / param slab: resident in VMEM across all grid steps.
                pl.BlockSpec(w_in.shape, lambda i: (0, 0)),
                pl.BlockSpec(w2.shape, lambda i: (0, 0)),
                pl.BlockSpec(pvec.shape, lambda i: (0, 0)),
            ],
            out_specs=pl.BlockSpec((tb, 1), lambda i: (i, 0)),
        ),
        compiler_params=pltpu.CompilerParams(
            dimension_semantics=("parallel",),  # megacore-shard batch on v7x
        ),
    )(xcat, w_in, w2, pvec)


def init_critic_params(key, input_dim, fc1_dim, fc2_dim, n_actions):
    """Deterministic init mirroring Critic.init_weights (uniform fan-in bounds)."""
    ks = jax.random.split(key, 8)
    f1 = 1.0 / jnp.sqrt(jnp.float32(input_dim))
    f2 = 1.0 / jnp.sqrt(jnp.float32(fc1_dim))
    fa = 1.0 / jnp.sqrt(jnp.float32(n_actions))
    f3 = 0.003

    def u(k, shape, bound):
        return jax.random.uniform(k, shape, jnp.float32, -bound, bound)

    return {
        # weights stored as (in, out) == PyTorch W.T
        "w1": u(ks[0], (input_dim, fc1_dim), f1),
        "b1": u(ks[1], (1, fc1_dim), f1),
        "g1": jnp.ones((1, fc1_dim), jnp.float32),
        "be1": jnp.zeros((1, fc1_dim), jnp.float32),
        "w2": u(ks[2], (fc1_dim, fc2_dim), f2),
        "b2": u(ks[3], (1, fc2_dim), f2),
        "g2": jnp.ones((1, fc2_dim), jnp.float32),
        "be2": jnp.zeros((1, fc2_dim), jnp.float32),
        "wa": u(ks[4], (n_actions, fc2_dim), fa),
        "ba": u(ks[5], (1, fc2_dim), fa),
        "wq": u(ks[6], (fc2_dim, 1), f3),
        "bq": u(ks[7], (1, 1), f3),
    }


def critic_forward_ref(state, action, p, matmul_dtype=jnp.float32):
    """Pure-JAX reference (weights round-tripped through the matmul dtype)."""
    def rt(w):
        return w.astype(matmul_dtype).astype(jnp.float32)

    def ln(x, g, b):
        mu = jnp.mean(x, -1, keepdims=True)
        var = jnp.mean((x - mu) ** 2, -1, keepdims=True)
        return (x - mu) / jnp.sqrt(var + LN_EPS) * g + b

    h = jnp.maximum(ln(state @ rt(p["w1"]) + p["b1"], p["g1"], p["be1"]), 0.0)
    s = ln(h @ rt(p["w2"]) + p["b2"], p["g2"], p["be2"])
    av = jnp.maximum(action @ rt(p["wa"]) + p["ba"], 0.0)
    sa = jnp.maximum(s + av, 0.0)
    return sa @ p["wq"] + p["bq"]


if __name__ == "__main__":
    key = jax.random.PRNGKey(0)
    k_state, k_action, k_params = jax.random.split(key, 3)

    B, INPUT_DIM, FC1, FC2, N_ACTIONS = 8, 16, 32, 32, 4

    state = jax.random.normal(k_state, (B, INPUT_DIM), jnp.float32)
    action = jax.random.normal(k_action, (B, N_ACTIONS), jnp.float32)
    params = init_critic_params(k_params, INPUT_DIM, FC1, FC2, N_ACTIONS)

    # f32 matmul-operand path: tight check against the pure-JAX reference.
    packed_f32 = pack_critic_params(params, jnp.float32)
    out = jax.block_until_ready(critic_forward(state, action, packed_f32))
    ref = critic_forward_ref(state, action, params, jnp.float32)
    assert out.shape == (B, 1)
    assert jnp.allclose(out, ref, atol=1e-4, rtol=1e-4), (out, ref)

    # bf16 matmul-operand path (weights stored bf16, LN/relu/q-head kept f32).
    packed_bf16 = pack_critic_params(params, jnp.bfloat16)
    out_bf16 = jax.block_until_ready(critic_forward(state, action, packed_bf16))
    ref_bf16 = critic_forward_ref(state, action, params, jnp.bfloat16)
    assert jnp.allclose(out_bf16, ref_bf16, atol=2e-2, rtol=2e-2), (out_bf16, ref_bf16)

    # TODO(synk): if fc dims become tunable, pad features to multiples of 128
    # (with masked LayerNorm reductions) for lane-dense VPU/XLU work.

    print("KERNEL_OK")
</pallas_src>

<mosaic_0001>
module attributes {stable_mosaic.version = 11 : i64} {
  func.func @critic_kernel(%arg0: i32, %arg1: memref<8x20xf32, #tpu.memory_space<vmem>>, %arg2: memref<20x64xf32, #tpu.memory_space<vmem>>, %arg3: memref<32x32xf32, #tpu.memory_space<vmem>>, %arg4: memref<9x32xf32, #tpu.memory_space<vmem>>, %arg5: memref<8x1xf32, #tpu.memory_space<vmem>>) attributes {dimension_semantics = [#tpu.dimension_semantics<parallel>], iteration_bounds = array<i64: 1>, scalar_prefetch = 0 : i64, scratch_operands = 0 : i64, tpu.core_type = #tpu.core_type<tc>, window_params = [{transform_indices = @transform_0, window_bounds = array<i64: 8, 20>}, {pipeline_mode = #tpu.pipeline_mode<synchronous>, transform_indices = @transform_1, window_bounds = array<i64: 20, 64>}, {pipeline_mode = #tpu.pipeline_mode<synchronous>, transform_indices = @transform_2, window_bounds = array<i64: 32, 32>}, {pipeline_mode = #tpu.pipeline_mode<synchronous>, transform_indices = @transform_3, window_bounds = array<i64: 9, 32>}, {transform_indices = @transform_4, window_bounds = array<i64: 8, 1>}]} {
    %c0 = arith.constant 0 : index
    %c0_0 = arith.constant 0 : index
    %0 = vector.load %arg1[%c0, %c0_0] : memref<8x20xf32, #tpu.memory_space<vmem>>, vector<8x20xf32>
    %c0_1 = arith.constant 0 : index
    %c0_2 = arith.constant 0 : index
    %1 = vector.load %arg2[%c0_1, %c0_2] : memref<20x64xf32, #tpu.memory_space<vmem>>, vector<20x64xf32>
    %c0_3 = arith.constant 0 : index
    %c0_4 = arith.constant 0 : index
    %2 = vector.load %arg3[%c0_3, %c0_4] : memref<32x32xf32, #tpu.memory_space<vmem>>, vector<32x32xf32>
    %c0_5 = arith.constant 0 : index
    %c0_6 = arith.constant 0 : index
    %3 = vector.load %arg4[%c0_5, %c0_6] : memref<9x32xf32, #tpu.memory_space<vmem>>, vector<9x32xf32>
    %4 = vector.extract_strided_slice %3 {offsets = [0, 0], sizes = [1, 32], strides = [1, 1]} : vector<9x32xf32> to vector<1x32xf32>
    %5 = vector.extract_strided_slice %3 {offsets = [1, 0], sizes = [1, 32], strides = [1, 1]} : vector<9x32xf32> to vector<1x32xf32>
    %6 = vector.extract_strided_slice %3 {offsets = [2, 0], sizes = [1, 32], strides = [1, 1]} : vector<9x32xf32> to vector<1x32xf32>
    %7 = vector.extract_strided_slice %3 {offsets = [3, 0], sizes = [1, 32], strides = [1, 1]} : vector<9x32xf32> to vector<1x32xf32>
    %8 = vector.extract_strided_slice %3 {offsets = [4, 0], sizes = [1, 32], strides = [1, 1]} : vector<9x32xf32> to vector<1x32xf32>
    %9 = vector.extract_strided_slice %3 {offsets = [5, 0], sizes = [1, 32], strides = [1, 1]} : vector<9x32xf32> to vector<1x32xf32>
    %10 = vector.extract_strided_slice %3 {offsets = [6, 0], sizes = [1, 32], strides = [1, 1]} : vector<9x32xf32> to vector<1x32xf32>
    %11 = vector.extract_strided_slice %3 {offsets = [7, 0], sizes = [1, 32], strides = [1, 1]} : vector<9x32xf32> to vector<1x32xf32>
    %12 = vector.extract_strided_slice %3 {offsets = [8, 0], sizes = [1, 1], strides = [1, 1]} : vector<9x32xf32> to vector<1x1xf32>
    %cst = arith.constant dense<0.000000e+00> : vector<8x64xf32>
    %13 = tpu.matmul %0, %1, %cst {dimension_numbers = #tpu.dot_dimension_numbers<[1], [0], [0], [1], [0, 0, 1, 1], [], []>} : vector<8x20xf32>, vector<20x64xf32>, vector<8x64xf32> -> vector<8x64xf32>
    %14 = vector.extract_strided_slice %13 {offsets = [0, 0], sizes = [8, 32], strides = [1, 1]} : vector<8x64xf32> to vector<8x32xf32>
    %15 = vector.broadcast %4 : vector<1x32xf32> to vector<8x32xf32>
    %16 = arith.addf %14, %15 : vector<8x32xf32>
    %17 = vector.extract_strided_slice %13 {offsets = [0, 32], sizes = [8, 32], strides = [1, 1]} : vector<8x64xf32> to vector<8x32xf32>
    %18 = vector.broadcast %10 : vector<1x32xf32> to vector<8x32xf32>
    %19 = arith.addf %17, %18 : vector<8x32xf32>
    %cst_7 = arith.constant 0.000000e+00 : f32
    %20 = vector.broadcast %cst_7 : f32 to vector<8x32xf32>
    %21 = arith.maximumf %19, %20 : vector<8x32xf32>
    %cst_8 = arith.constant dense<0.000000e+00> : vector<8xf32>
    %22 = vector.multi_reduction <add>, %16, %cst_8 [1] : vector<8x32xf32> to vector<8xf32>
    %23 = vector.shape_cast %22 : vector<8xf32> to vector<8x1xf32>
    %cst_9 = arith.constant 3.200000e+01 : f32
    %24 = vector.broadcast %cst_9 : f32 to vector<8x1xf32>
    %25 = arith.divf %23, %24 : vector<8x1xf32>
    %26 = arith.mulf %16, %16 : vector<8x32xf32>
    %cst_10 = arith.constant dense<0.000000e+00> : vector<8xf32>
    %27 = vector.multi_reduction <add>, %26, %cst_10 [1] : vector<8x32xf32> to vector<8xf32>
    %28 = vector.shape_cast %27 : vector<8xf32> to vector<8x1xf32>
    %cst_11 = arith.constant 3.200000e+01 : f32
    %29 = vector.broadcast %cst_11 : f32 to vector<8x1xf32>
    %30 = arith.divf %28, %29 : vector<8x1xf32>
    %31 = arith.mulf %25, %25 : vector<8x1xf32>
    %32 = arith.subf %30, %31 : vector<8x1xf32>
    %cst_12 = arith.constant 0.000000e+00 : f32
    %33 = vector.broadcast %cst_12 : f32 to vector<8x1xf32>
    %34 = arith.maximumf %32, %33 : vector<8x1xf32>
    %cst_13 = arith.constant 9.99999974E-6 : f32
    %35 = vector.broadcast %cst_13 : f32 to vector<8x1xf32>
    %36 = arith.addf %34, %35 : vector<8x1xf32>
    %37 = math.rsqrt %36 : vector<8x1xf32>
    %38 = vector.broadcast %25 : vector<8x1xf32> to vector<8x32xf32>
    %39 = arith.subf %16, %38 : vector<8x32xf32>
    %40 = vector.broadcast %37 : vector<8x1xf32> to vector<8x32xf32>
    %41 = arith.mulf %39, %40 : vector<8x32xf32>
    %42 = vector.broadcast %5 : vector<1x32xf32> to vector<8x32xf32>
    %43 = arith.mulf %41, %42 : vector<8x32xf32>
    %44 = vector.broadcast %6 : vector<1x32xf32> to vector<8x32xf32>
    %45 = arith.addf %43, %44 : vector<8x32xf32>
    %cst_14 = arith.constant 0.000000e+00 : f32
    %46 = vector.broadcast %cst_14 : f32 to vector<8x32xf32>
    %47 = arith.maximumf %45, %46 : vector<8x32xf32>
    %cst_15 = arith.constant dense<0.000000e+00> : vector<8x32xf32>
    %48 = tpu.matmul %47, %2, %cst_15 {dimension_numbers = #tpu.dot_dimension_numbers<[1], [0], [0], [1], [0, 0, 1, 1], [], []>} : vector<8x32xf32>, vector<32x32xf32>, vector<8x32xf32> -> vector<8x32xf32>
    %49 = vector.broadcast %7 : vector<1x32xf32> to vector<8x32xf32>
    %50 = arith.addf %48, %49 : vector<8x32xf32>
    %cst_16 = arith.constant dense<0.000000e+00> : vector<8xf32>
    %51 = vector.multi_reduction <add>, %50, %cst_16 [1] : vector<8x32xf32> to vector<8xf32>
    %52 = vector.shape_cast %51 : vector<8xf32> to vector<8x1xf32>
    %cst_17 = arith.constant 3.200000e+01 : f32
    %53 = vector.broadcast %cst_17 : f32 to vector<8x1xf32>
    %54 = arith.divf %52, %53 : vector<8x1xf32>
    %55 = arith.mulf %50, %50 : vector<8x32xf32>
    %cst_18 = arith.constant dense<0.000000e+00> : vector<8xf32>
    %56 = vector.multi_reduction <add>, %55, %cst_18 [1] : vector<8x32xf32> to vector<8xf32>
    %57 = vector.shape_cast %56 : vector<8xf32> to vector<8x1xf32>
    %cst_19 = arith.constant 3.200000e+01 : f32
    %58 = vector.broadcast %cst_19 : f32 to vector<8x1xf32>
    %59 = arith.divf %57, %58 : vector<8x1xf32>
    %60 = arith.mulf %54, %54 : vector<8x1xf32>
    %61 = arith.subf %59, %60 : vector<8x1xf32>
    %cst_20 = arith.constant 0.000000e+00 : f32
    %62 = vector.broadcast %cst_20 : f32 to vector<8x1xf32>
    %63 = arith.maximumf %61, %62 : vector<8x1xf32>
    %cst_21 = arith.constant 9.99999974E-6 : f32
    %64 = vector.broadcast %cst_21 : f32 to vector<8x1xf32>
    %65 = arith.addf %63, %64 : vector<8x1xf32>
    %66 = math.rsqrt %65 : vector<8x1xf32>
    %67 = vector.broadcast %54 : vector<8x1xf32> to vector<8x32xf32>
    %68 = arith.subf %50, %67 : vector<8x32xf32>
    %69 = vector.broadcast %66 : vector<8x1xf32> to vector<8x32xf32>
    %70 = arith.mulf %68, %69 : vector<8x32xf32>
    %71 = vector.broadcast %8 : vector<1x32xf32> to vector<8x32xf32>
    %72 = arith.mulf %70, %71 : vector<8x32xf32>
    %73 = vector.broadcast %9 : vector<1x32xf32> to vector<8x32xf32>
    %74 = arith.addf %72, %73 : vector<8x32xf32>
    %75 = arith.addf %74, %21 : vector<8x32xf32>
    %cst_22 = arith.constant 0.000000e+00 : f32
    %76 = vector.broadcast %cst_22 : f32 to vector<8x32xf32>
    %77 = arith.maximumf %75, %76 : vector<8x32xf32>
    %78 = vector.broadcast %11 : vector<1x32xf32> to vector<8x32xf32>
    %79 = arith.mulf %77, %78 : vector<8x32xf32>
    %cst_23 = arith.constant dense<0.000000e+00> : vector<8xf32>
    %80 = vector.multi_reduction <add>, %79, %cst_23 [1] : vector<8x32xf32> to vector<8xf32>
    %81 = vector.shape_cast %80 : vector<8xf32> to vector<8x1xf32>
    %82 = vector.broadcast %12 : vector<1x1xf32> to vector<8x1xf32>
    %83 = arith.addf %81, %82 : vector<8x1xf32>
    %c0_24 = arith.constant 0 : index
    %c0_25 = arith.constant 0 : index
    %84 = vector.load %arg5[%c0_24, %c0_25] : memref<8x1xf32, #tpu.memory_space<vmem>>, vector<8x1xf32>
    tpu.vector_store %arg5[%c0_24, %c0_25], %83 {strides = array<i32>} : memref<8x1xf32, #tpu.memory_space<vmem>>, vector<8x1xf32>,
    return
  }
  func.func @transform_0(%arg0: i32) -> (i32, i32) {
    %c0_i32 = arith.constant 0 : i32
    %c0_i32_0 = arith.constant 0 : i32
    return %arg0, %c0_i32 : i32, i32
  }
  func.func @transform_1(%arg0: i32) -> (i32, i32) {
    %c0_i32 = arith.constant 0 : i32
    %c0_i32_0 = arith.constant 0 : i32
    %c0_i32_1 = arith.constant 0 : i32
    return %c0_i32, %c0_i32_0 : i32, i32
  }
  func.func @transform_2(%arg0: i32) -> (i32, i32) {
    %c0_i32 = arith.constant 0 : i32
    %c0_i32_0 = arith.constant 0 : i32
    %c0_i32_1 = arith.constant 0 : i32
    return %c0_i32, %c0_i32_0 : i32, i32
  }
  func.func @transform_3(%arg0: i32) -> (i32, i32) {
    %c0_i32 = arith.constant 0 : i32
    %c0_i32_0 = arith.constant 0 : i32
    %c0_i32_1 = arith.constant 0 : i32
    return %c0_i32, %c0_i32_0 : i32, i32
  }
  func.func @transform_4(%arg0: i32) -> (i32, i32) {
    %c0_i32 = arith.constant 0 : i32
    %c0_i32_0 = arith.constant 0 : i32
    return %arg0, %c0_i32 : i32, i32
  }
}

</mosaic_0001>

<bundles_post_ra>
// kernel: tpu_custom_call.1
= control target key start
LH: loop header
LB: loop body
LE: loop exit
PB: predicated region body
PF: predicated region fallthrough
CT: control target
= control target key end

     0   :  { %9 = vsyncpa [#allocation3], 0  ;;  %s424_s0 = inlined_call_operand.hbm [shape: f32[8,20], index: 0, kind: input, shape index: {}]   ;;  %s425_s1 = inlined_call_operand.hbm [shape: f32[20,64], index: 1, kind: input, shape index: {}]   ;;  %s426_s2 = inlined_call_operand.hbm [shape: f32[32,32], index: 2, kind: input, shape index: {}]   ;;  %s427_s3 = inlined_call_operand.hbm [shape: f32[9,32], index: 3, kind: input, shape index: {}]   ;;  %s428_s4 = inlined_call_operand.vmem [shape: f32[8,1], index: 4, kind: output, shape index: {}]  }
   0x1   :  { %10 = vsyncpa [#allocation5], 0  ;;  %s27_s17 = sshll.u32 %s425_s1, 4  ;;  %s28_s17 = int_to_ptr.hbm [resolvable:$true] %s27_s17 }
   0x2   :  { %11 = vsyncpa [#allocation8], 0  ;;  %s359_s18 = smov [#allocation4]   ;;  %s17_s22 = sshll.u32 %s424_s0, 4  ;;  %s18_s22 = int_to_ptr.hbm [resolvable:$true] %s17_s22 }
   0x3   :  { %s29_s19 = sshll.u32 %s359_s18, 4  ;;  %s360_s23 = smov 128   ;;  %s30_s19 = int_to_ptr.vmem [resolvable:$true] %s29_s19 }
   0x4   :  { %s361_s24 = smov 8   ;;  %s362_s25 = smov [#allocation2]  }
   0x5   :  { %35 = dma.hbm_to_vmem [thread:$0]  %s28_s17, 384, %s30_s19, [#allocation5], %s360_s23, %s360_s23, %s361_s24  }
   0x6   :  { %s19_s26 = sshll.u32 %s362_s25, 4  ;;  %s40_s29 = sshll.u32 %s426_s2, 4  ;;  %s20_s26 = int_to_ptr.vmem [resolvable:$true] %s19_s26  ;;  %s41_s29 = int_to_ptr.hbm [resolvable:$true] %s40_s29 }
   0x7   :  { %22 = dma.hbm_to_vmem [thread:$0]  %s18_s22, 128, %s20_s26, [#allocation3]  }
   0x8   :  { %s53_s5 = sshll.u32 %s427_s3, 4  ;;  %s363_s6 = smov [#allocation6]   ;;  %s54_s5 = int_to_ptr.hbm [resolvable:$true] %s53_s5 }
   0x9   :  { %s42_s7 = sshll.u32 %s363_s6, 4  ;;  %s364_s0 = smov [#allocation7]   ;;  %s43_s7 = int_to_ptr.vmem [resolvable:$true] %s42_s7 }
   0xa   :  { %48 = dma.hbm_to_vmem [thread:$0]  %s41_s29, 512, %s43_s7, [#allocation5], %s360_s23, %s360_s23, %s361_s24  }
   0xb   :  { %s55_s8 = sshll.u32 %s364_s0, 4  ;;  %s56_s8 = int_to_ptr.vmem [resolvable:$true] %s55_s8 }
   0xc   :  { %61 = dma.hbm_to_vmem [thread:$0]  %s54_s5, 256, %s56_s8, [#allocation8], %s360_s23, %s360_s23, %s361_s24  }
   0xd   :  { %353 = dma.done.wait [#allocation3], 128  }
   0xe   :  { %354 = vsyncadd [#allocation3], 4294967168 }
   0xf   :  { %355 = dma.done.wait [#allocation5], 896  }
  0x10   :  { %356 = vsyncadd [#allocation5], 4294966400 }
  0x11   :  { %357 = dma.done.wait [#allocation8], 256  }
  0x12   :  { %358 = vsyncadd [#allocation8], 4294967040  ;;  %vm92_vm0 = vcmask 1043456   ;;  %v81_v0 = vld [vmem:[#allocation4 + $0x10] sm:$0xf]  ;;  %v80_v1 = vld [vmem:[#allocation4 + $0x8] sm:$0xff] }
  0x13   :  { %238 = vmatpush.msk.msra.mxu0 %vm92_vm0, %v81_v0  ;;  %v405_v2 = vld [vmem:[#allocation7] sm:$0xff]  ;;  %v79_v3 = vld [vmem:[#allocation4] sm:$0xff]  ;;  %vm88_vm1 = vcmask 162816   ;;  %s365_s2 = smov 32   ;;  %vm125_vm2 = vcmask 261120   ;;  %v366_v12 = vmov 32.0  }
  0x14   :  { %v118_v4 = vperm.slane %v405_v2, 6  ;;  %v78_v5 = vld [vmem:[#allocation2] sm:$0xff]  ;;  %v116_v6 = vperm.slane %v405_v2, 0  ;;  %251 = vrcp.f32 %v366_v12  ;;  %v85_v19 = vld [vmem:[#allocation6 + $0x18] sm:$0xff]  ;;  %v84_v20 = vld [vmem:[#allocation6 + $0x10] sm:$0xff]  ;;  %v158_v38 = vperm.slane %v405_v2, 1 }
  0x15   :  { %110 = vmatpush.msra.mxu0 %v80_v1  ;;  %179 = vmatpush.msra.mxu1 %v85_v19  ;;  %v83_v22 = vld [vmem:[#allocation6 + $0x8] sm:$0xff]  ;;  %v82_v23 = vld [vmem:[#allocation6] sm:$0xff]  ;;  %v160_v41 = vperm.slane %v405_v2, 2  ;;  %v163_v45 = vperm.slane %v405_v2, 3  ;;  %s367_s3 = smov 96   ;;  %vm229_vm10 = vcmask 7168  }
  0x16   :  { %120 = vrot.lane.b32.xlu1 %v118_v4, %s365_s2 }
  0x17   :  { %111 = vmatpush.msra.mxu0 %v79_v3  ;;  %180 = vmatpush.msra.mxu1 %v84_v20 }
  0x18   :  { %239 = vmatmul.msk.f32.vlgmr.msra.gmra.mxu0 %vm88_vm1, %v78_v5 }
  0x19   :  { %181 = vmatpush.msra.mxu1 %v83_v22 }
  0x1a   :  { %v252_v13 = vpop.eup %251 }
  0x1b   :  { %v130_v14 = vmul.f32 32.0, %v252_v13  ;;  %vm134_vm3 = vweird.f32 %v252_v13  ;;  %182 = vmatpush.msra.mxu1 %v82_v23 }
  0x1d   :  { %v131_v15 = vsub.f32 1.0, %v130_v14  ;;  %v222_v14 = vperm.slane %v405_v2, 7 }
  0x1f   :  { %v132_v16 = vmul.f32 %v252_v13, %v131_v15 }
  0x21   :  { %v133_v17 = vadd.f32 %v252_v13, %v132_v16 }
  0x23   :  { %v135_v21 = vsel %vm134_vm3, %v252_v13, %v133_v17 }
  0x88   :  { %v121_v51 = vpop.permute.xlu1 %120 }
  0x95   :  { %v113_v7 = vpop.f32.mrf.mxu0 }
  0x96   :  { %v117_v8 = vadd.f32 %v116_v6, %v113_v7  ;;  %v123_v52 = vadd.f32 %v121_v51, %v113_v7  ;;  %v212_v6 = vperm.slane %v405_v2, 4 }
  0x98   :  { %v126_v9 = vsel %vm125_vm2, %v117_v8, 0.0  ;;  %v137_v10 = vmul.f32 %v117_v8, %v117_v8  ;;  %v124_v53 = vmax.f32 %v123_v52, 0.0 }
  0x99   :  { %127 = vadd.xlane.f32.xlu0 %v126_v9 }
  0x9a   :  { %v138_v11 = vsel %vm125_vm2, %v137_v10, 0.0 }
  0xa1   :  { %139 = vadd.xlane.f32.xlu0 %v138_v11 }
 0x10c   :  { %v128_v18 = vpop.xlane.xlu0 %127 }
 0x10d   :  { %v136_v24 = vmul.f32 %v135_v21, %v128_v18  ;;  %v250_v18 = vld [vmem:[#allocation7 + $0x8] ss:$0 sm:$0xff] }
 0x10f   :  { %v142_v26 = vmul.f32 %v136_v24, %v136_v24  ;;  %v156_v37 = vsub.f32 %v117_v8, %v136_v24  ;;  %v214_v8 = vperm.slane %v405_v2, 5 }
 0x114   :  { %v140_v25 = vpop.xlane.xlu0 %139 }
 0x115   :  { %v141_v27 = vmul.f32 %v140_v25, %v135_v21 }
 0x117   :  { %v143_v28 = vsub.f32 %v141_v27, %v142_v26 }
 0x119   :  { %v144_v29 = vmax.f32 %v143_v28, 0.0 }
 0x11b   :  { %v145_v30 = vadd.f32 1e-05, %v144_v29 }
 0x11d   :  { %253 = vrsqrt.f32 %v145_v30  ;;  %vm152_vm5 = vweird.f32 %v145_v30 }
 0x123   :  { %v254_v31 = vpop.eup %253 }
 0x124   :  { %v147_v32 = vmul.f32 %v254_v31, %v145_v30  ;;  %vm153_vm4 = vweird.f32 %v254_v31 }
 0x125   :  { %vm154_vm6 = vmor %vm152_vm5, %vm153_vm4 }
 0x126   :  { %v148_v33 = vmul.f32 %v254_v31, %v147_v32 }
 0x128   :  { %v149_v34 = vmul.f32 0.5, %v148_v33 }
 0x12a   :  { %v150_v35 = vsub.f32 1.5, %v149_v34 }
 0x12c   :  { %v151_v36 = vmul.f32 %v254_v31, %v150_v35 }
 0x12e   :  { %v155_v39 = vsel %vm154_vm6, %v254_v31, %v151_v36 }
 0x12f   :  { %v157_v40 = vmul.f32 %v156_v37, %v155_v39 }
 0x131   :  { %v159_v42 = vmul.f32 %v158_v38, %v157_v40 }
 0x133   :  { %v161_v43 = vadd.f32 %v160_v41, %v159_v42 }
 0x135   :  { %v162_v44 = vmax.f32 %v161_v43, 0.0 }
 0x137   :  { %240 = vmatmul.msk.f32.vlgmr.msra.gmra.mxu1 %vm125_vm2, %v162_v44 }
 0x1b4   :  { %v184_v46 = vpop.f32.mrf.mxu1 }
 0x1b5   :  { %v185_v47 = vadd.f32 %v184_v46, %v163_v45 }
 0x1b7   :  { %v187_v48 = vsel %vm125_vm2, %v185_v47, 0.0  ;;  %v191_v49 = vmul.f32 %v185_v47, %v185_v47 }
 0x1b8   :  { %188 = vadd.xlane.f32.xlu1 %v187_v48 }
 0x1b9   :  { %v192_v50 = vsel %vm125_vm2, %v191_v49, 0.0 }
 0x1ba   :  { %193 = vadd.xlane.f32.xlu2 %v192_v50 }
 0x1d2   :  { %217 = vrot.lane.b32.xlu2 %v124_v53, %s367_s3 }
 0x22b   :  { %v189_v54 = vpop.xlane.xlu1 %188 }
 0x22c   :  { %v190_v55 = vmul.f32 %v189_v54, %v135_v21 }
 0x22d   :  { %v194_v56 = vpop.xlane.xlu2 %193 }
 0x22e   :  { %v196_v57 = vmul.f32 %v190_v55, %v190_v55  ;;  %v195_v58 = vmul.f32 %v194_v56, %v135_v21  ;;  %v210_v5 = vsub.f32 %v185_v47, %v190_v55 }
 0x230   :  { %v197_v59 = vsub.f32 %v195_v58, %v196_v57 }
 0x232   :  { %v198_v60 = vmax.f32 %v197_v59, 0.0 }
 0x234   :  { %v199_v61 = vadd.f32 1e-05, %v198_v60 }
 0x235   :  { %v218_v12 = vpop.permute.xlu2 %217 }
 0x236   :  { %255 = vrsqrt.f32 %v199_v61  ;;  %vm206_vm8 = vweird.f32 %v199_v61 }
 0x23c   :  { %v256_v62 = vpop.eup %255 }
 0x23d   :  { %v201_v63 = vmul.f32 %v256_v62, %v199_v61  ;;  %vm207_vm7 = vweird.f32 %v256_v62 }
 0x23e   :  { %vm208_vm9 = vmor %vm206_vm8, %vm207_vm7 }
 0x23f   :  { %v202_v0 = vmul.f32 %v256_v62, %v201_v63 }
 0x241   :  { %v203_v1 = vmul.f32 0.5, %v202_v0 }
 0x243   :  { %v204_v3 = vsub.f32 1.5, %v203_v1 }
 0x245   :  { %v205_v4 = vmul.f32 %v256_v62, %v204_v3 }
 0x247   :  { %v209_v7 = vsel %vm208_vm9, %v256_v62, %v205_v4 }
 0x248   :  { %v211_v9 = vmul.f32 %v210_v5, %v209_v7 }
 0x24a   :  { %v213_v10 = vmul.f32 %v212_v6, %v211_v9 }
 0x24c   :  { %v215_v11 = vadd.f32 %v214_v8, %v213_v10 }
 0x24e   :  { %v220_v13 = vadd.f32 %v218_v12, %v215_v11 }
 0x250   :  { %v221_v15 = vmax.f32 %v220_v13, 0.0 }
 0x252   :  { %v223_v16 = vmul.f32 %v222_v14, %v221_v15 }
 0x254   :  { %v224_v17 = vsel %vm125_vm2, %v223_v16, 0.0 }
 0x255   :  { %225 = vadd.xlane.f32.xlu0 %v224_v17 }
 0x2c8   :  { %v226_v19 = vpop.xlane.xlu0 %225 }
 0x2c9   :  { %v228_v20 = vadd.f32 %v250_v18, %v226_v19 }
 0x2cb   :  { %230 = vst.msk [vmem:[%s428_s4] sm:$0xff] %vm229_vm10, %v228_v20 }
 0x2cc   :  { %235 = vsyncpa [#allocation3], 1 }
 0x2cd   :  { %236 = vsyncpa [#allocation5], 1 }
 0x2ce   :  { %237 = vsyncpa [#allocation8], 1 }

</bundles_post_ra>
